<compile_context>
chip_gen: v6e
topology: v6e:2x2x1
jax: 0.10.0
libtpu: 0.0.40
codegen_flags: <defaults>
</compile_context>

<pallas_src>
import functools

import jax
import jax.numpy as jnp
from jax import lax
from jax.experimental import pallas as pl
from jax.experimental.pallas import tpu as pltpu


_LANE = 128                              # f32 lane width / column-tile width
_VMEM_BUDGET_BYTES = 18 * 1024 * 1024    # double-buffered pipeline footprint target
_VMEM_LIMIT_BYTES = 32 * 1024 * 1024     # scoped VMEM limit (fits v5e/v6e/v7x)


def _extract_lane(tile, lane):
    """Select column `lane` of a (tb, tc) tile as a (tb, 1) vector.

    broadcasted_iota + where + lane-sum: the select is VPU work, the
    cross-lane reduction goes to the XLU slot (idle here), no MXU involved.
    """
    lanes = lax.broadcasted_iota(jnp.int32, tile.shape, dimension=1)
    return jnp.sum(jnp.where(lanes == lane, tile, 0.0), axis=-1, keepdims=True)


def _maxnet_kernel_one_tile(x_ref, o_ref, *, mx_lane, my_lane):
    # Both mx and my live in the same 128-lane column tile of x.
    xt = x_ref[...]                                   # (tb, tc) f32
    a = _extract_lane(xt, mx_lane)                    # x[:, mx]  (tb, 1)
    b = _extract_lane(xt, my_lane)                    # x[:, my]  (tb, 1)
    h0 = jnp.maximum(a - b, 0.0)                      # ReLU(x[:,mx] - x[:,my])
    h1 = jnp.maximum(b, 0.0)                          # ReLU(x[:,my])
    o_ref[...] = jnp.maximum(h0 + h1, 0.0).astype(o_ref.dtype)


def _maxnet_kernel_two_tile(xa_ref, xb_ref, o_ref, *, mx_lane, my_lane):
    # mx and my live in different 128-lane column tiles of x.
    a = _extract_lane(xa_ref[...], mx_lane)           # x[:, mx]  (tb, 1)
    b = _extract_lane(xb_ref[...], my_lane)           # x[:, my]  (tb, 1)
    h0 = jnp.maximum(a - b, 0.0)
    h1 = jnp.maximum(b, 0.0)
    o_ref[...] = jnp.maximum(h0 + h1, 0.0).astype(o_ref.dtype)


def _choose_batch_tile(b, n_in_tiles):
    """Batch tile: multiple of 128, sized so the whole double-buffered pipeline
    (n_in_tiles input column-tiles + 1 lane-padded output tile) stays within
    _VMEM_BUDGET_BYTES."""
    per_row_bytes = (n_in_tiles + 1) * 2 * _LANE * 4   # 2 = double buffering
    tb = _VMEM_BUDGET_BYTES // per_row_bytes
    tb = max(8, (tb // 128) * 128)
    return b if b <= tb else tb


def make_max_network_params(n_inputs: int, mask, dtype=jnp.float32):
    """Reference W1/W2 with the exact construction order of the PyTorch module."""
    mx, my = mask
    w1 = jnp.zeros((2, n_inputs), dtype=dtype)
    w1 = w1.at[0, mx].set(1.0)
    w1 = w1.at[0, my].set(-1.0)
    w1 = w1.at[1, my].set(1.0)
    w2 = jnp.ones((1, 2), dtype=dtype)
    return w1, w2


def max_network_forward(x, mask, *, tb=None):
    """MaxNetwork forward.

    x:    (batch, n_inputs) float32
    mask: (mx, my) static Python ints (the module's constructor arg), mx != my.
    Returns (batch, 1) float32.
    """
    b, n = x.shape
    mx, my = int(mask[0]), int(mask[1])

    if n <= _LANE:
        tc = n                       # full-width block (== array dim -> legal)
        mx_tile = my_tile = 0
        mx_lane, my_lane = mx, my
    else:
        tc = _LANE
        mx_tile, mx_lane = divmod(mx, _LANE)
        my_tile, my_lane = divmod(my, _LANE)

    same_tile = mx_tile == my_tile
    n_in_tiles = 1 if same_tile else 2

    if tb is None:
        tb = _choose_batch_tile(b, n_in_tiles)
    tb = min(tb, b)
    num_steps = pl.cdiv(b, tb)       # no host-side pad: last block is a boundary block

    if same_tile:
        kernel = functools.partial(
            _maxnet_kernel_one_tile, mx_lane=mx_lane, my_lane=my_lane)
        in_specs = [pl.BlockSpec((tb, tc), lambda i, t=mx_tile: (i, t))]
        operands = (x,)
    else:
        kernel = functools.partial(
            _maxnet_kernel_two_tile, mx_lane=mx_lane, my_lane=my_lane)
        in_specs = [
            pl.BlockSpec((tb, tc), lambda i, t=mx_tile: (i, t)),
            pl.BlockSpec((tb, tc), lambda i, t=my_tile: (i, t)),
        ]
        operands = (x, x)            # same array, two column-tile windows

    out = pl.pallas_call(
        kernel,
        out_shape=jax.ShapeDtypeStruct((b, 1), x.dtype),
        grid_spec=pltpu.PrefetchScalarGridSpec(
            num_scalar_prefetch=0,
            grid=(num_steps,),
            in_specs=in_specs,
            out_specs=pl.BlockSpec((tb, 1), lambda i: (i, 0)),
        ),
        compiler_params=pltpu.CompilerParams(
            # Independent batch steps -> shard across TensorCores on v7x.
            dimension_semantics=("parallel",),
            vmem_limit_bytes=_VMEM_LIMIT_BYTES,
        ),
    )(*operands)
    return out


def _reference_forward(x, w1, w2):
    # HIGHEST precision so the reference itself is not bf16-truncated on TPU.
    h = jnp.maximum(jnp.dot(x, w1.T, precision=lax.Precision.HIGHEST), 0.0)
    return jnp.maximum(jnp.dot(h, w2.T, precision=lax.Precision.HIGHEST), 0.0)


if __name__ == "__main__":
    key = jax.random.PRNGKey(0)

    cases = [
        # (batch, n_inputs, mask, tb_override)
        (8, 16, (3, 7), None),       # n <= 128: one column tile, single batch block
        (300, 384, (5, 261), 128),   # two column tiles, multi-step grid + batch boundary block
        (40, 200, (3, 170), None),   # two column tiles, partial (lane-boundary) column tile
    ]

    for idx, (batch, n_inputs, mask, tb) in enumerate(cases):
        key, sub = jax.random.split(key)
        x = jax.random.normal(sub, (batch, n_inputs), dtype=jnp.float32)

        out = max_network_forward(x, mask, tb=tb)
        out = jax.block_until_ready(out)

        w1, w2 = make_max_network_params(n_inputs, mask, dtype=jnp.float32)
        ref = _reference_forward(x, w1, w2)

        assert out.shape == (batch, 1), f"case {idx}: bad shape {out.shape}"
        assert jnp.allclose(out, ref, atol=1e-5, rtol=1e-5), f"case {idx}: mismatch"

    print("KERNEL_OK")
</pallas_src>

<mosaic_0001>
module attributes {stable_mosaic.version = 11 : i64} {
  func.func @_maxnet_kernel_one_tile(%arg0: i32, %arg1: memref<8x16xf32, #tpu.memory_space<vmem>>, %arg2: memref<8x1xf32, #tpu.memory_space<vmem>>) attributes {dimension_semantics = [#tpu.dimension_semantics<parallel>], iteration_bounds = array<i64: 1>, scalar_prefetch = 0 : i64, scratch_operands = 0 : i64, tpu.core_type = #tpu.core_type<tc>, window_params = [{transform_indices = @transform_0, window_bounds = array<i64: 8, 16>}, {transform_indices = @transform_1, window_bounds = array<i64: 8, 1>}]} {
    %c0 = arith.constant 0 : index
    %c0_0 = arith.constant 0 : index
    %0 = vector.load %arg1[%c0, %c0_0] : memref<8x16xf32, #tpu.memory_space<vmem>>, vector<8x16xf32>
    %1 = tpu.iota {dimensions = array<i32: 1>} : vector<8x16xi32>
    %c3_i32 = arith.constant 3 : i32
    %2 = vector.broadcast %c3_i32 : i32 to vector<8x16xi32>
    %3 = arith.cmpi eq, %1, %2 : vector<8x16xi32>
    %cst = arith.constant 0.000000e+00 : f32
    %4 = vector.broadcast %cst : f32 to vector<8x16xf32>
    %5 = arith.select %3, %0, %4 : vector<8x16xi1>, vector<8x16xf32>
    %cst_1 = arith.constant dense<0.000000e+00> : vector<8xf32>
    %6 = vector.multi_reduction <add>, %5, %cst_1 [1] : vector<8x16xf32> to vector<8xf32>
    %7 = vector.shape_cast %6 : vector<8xf32> to vector<8x1xf32>
    %8 = tpu.iota {dimensions = array<i32: 1>} : vector<8x16xi32>
    %c7_i32 = arith.constant 7 : i32
    %9 = vector.broadcast %c7_i32 : i32 to vector<8x16xi32>
    %10 = arith.cmpi eq, %8, %9 : vector<8x16xi32>
    %cst_2 = arith.constant 0.000000e+00 : f32
    %11 = vector.broadcast %cst_2 : f32 to vector<8x16xf32>
    %12 = arith.select %10, %0, %11 : vector<8x16xi1>, vector<8x16xf32>
    %cst_3 = arith.constant dense<0.000000e+00> : vector<8xf32>
    %13 = vector.multi_reduction <add>, %12, %cst_3 [1] : vector<8x16xf32> to vector<8xf32>
    %14 = vector.shape_cast %13 : vector<8xf32> to vector<8x1xf32>
    %15 = arith.subf %7, %14 : vector<8x1xf32>
    %cst_4 = arith.constant 0.000000e+00 : f32
    %16 = vector.broadcast %cst_4 : f32 to vector<8x1xf32>
    %17 = arith.maximumf %15, %16 : vector<8x1xf32>
    %cst_5 = arith.constant 0.000000e+00 : f32
    %18 = vector.broadcast %cst_5 : f32 to vector<8x1xf32>
    %19 = arith.maximumf %14, %18 : vector<8x1xf32>
    %20 = arith.addf %17, %19 : vector<8x1xf32>
    %cst_6 = arith.constant 0.000000e+00 : f32
    %21 = vector.broadcast %cst_6 : f32 to vector<8x1xf32>
    %22 = arith.maximumf %20, %21 : vector<8x1xf32>
    %c0_7 = arith.constant 0 : index
    %c0_8 = arith.constant 0 : index
    %23 = vector.load %arg2[%c0_7, %c0_8] : memref<8x1xf32, #tpu.memory_space<vmem>>, vector<8x1xf32>
    tpu.vector_store %arg2[%c0_7, %c0_8], %22 {strides = array<i32>} : memref<8x1xf32, #tpu.memory_space<vmem>>, vector<8x1xf32>,
    return
  }
  func.func @transform_0(%arg0: i32) -> (i32, i32) {
    %c0_i32 = arith.constant 0 : i32
    %c0_i32_0 = arith.constant 0 : i32
    return %arg0, %c0_i32 : i32, i32
  }
  func.func @transform_1(%arg0: i32) -> (i32, i32) {
    %c0_i32 = arith.constant 0 : i32
    %c0_i32_0 = arith.constant 0 : i32
    return %arg0, %c0_i32 : i32, i32
  }
}

</mosaic_0001>

<bundles_post_ra>
// kernel: tpu_custom_call.1
= control target key start
LH: loop header
LB: loop body
LE: loop exit
PB: predicated region body
PF: predicated region fallthrough
CT: control target
= control target key end

     0   :  { %6 = vsyncpa [#allocation3], 0  ;;  %s69_s6 = smov [#allocation2]   ;;  %s86_s0 = inlined_call_operand.hbm [shape: f32[8,16], index: 0, kind: input, shape index: {}]   ;;  %s87_s1 = inlined_call_operand.vmem [shape: f32[8,1], index: 1, kind: output, shape index: {}]  }
   0x1   :  { %s13_s7 = sshll.u32 %s69_s6, 4  ;;  %s14_s7 = int_to_ptr.vmem [resolvable:$true] %s13_s7 }
   0x2   :  { %s55_s8 = scalar_lea.vmem %s14_s7, 128  ;;  %p60_p1 = scmp.lt.s32.totalorder %s14_s7, %s14_s7 }
   0x3   :  { %p56_p0 = scmp.ne.s32.totalorder %s14_s7, %s55_s8  ;;  %p61_p2 = scmp.lt.s32.totalorder %s55_s8, %s55_s8 }
   0x5   :  { %p62_p3 = por %p61_p2, %p60_p1 }
   0x7   :  { %p63_p4 = pnand %p62_p3, %p56_p0 }
   0x9   :  { %66 = shalt.err (!%p63_p4)
}
   0xa   :  { %16 = dma.hbm_to_vmem [thread:$0]  %s86_s0, 128, %s14_s7, [#allocation3]  }
   0xb   :  { %67 = dma.done.wait [#allocation3], 128  }
   0xc   :  { %68 = vsyncadd [#allocation3], 4294967168  ;;  %v21_v0 = vlaneseq  ;;  %vm25_vm2 = vcmask 130048   ;;  %v20_v2 = vld [vmem:[#allocation2] sm:$0xff]  ;;  %vm39_vm3 = vcmask 7168  }
   0xe   :  { %v22_v1 = vand.u32 127, %v21_v0 }
  0x10   :  { %vm23_vm0 = vcmp.eq.s32.totalorder %v22_v1, 3  ;;  %vm29_vm1 = vcmp.eq.s32.totalorder %v22_v1, 7 }
  0x11   :  { %v24_v3 = vsel %vm23_vm0, %v20_v2, 0.0  ;;  %v30_v4 = vsel %vm29_vm1, %v20_v2, 0.0 }
  0x12   :  { %v26_v5 = vsel %vm25_vm2, %v24_v3, 0.0  ;;  %v31_v6 = vsel %vm25_vm2, %v30_v4, 0.0 }
  0x13   :  { %27 = vadd.xlane.f32.xlu0 %v26_v5 }
  0x17   :  { %32 = vadd.xlane.f32.xlu0 %v31_v6 }
  0x9c   :  { %v28_v7 = vpop.xlane.xlu0 %27 }
  0xa0   :  { %v33_v8 = vpop.xlane.xlu0 %32 }
  0xa1   :  { %v34_v9 = vsub.f32 %v28_v7, %v33_v8  ;;  %v36_v11 = vmax.f32 %v33_v8, 0.0 }
  0xa3   :  { %v35_v10 = vmax.f32 %v34_v9, 0.0 }
  0xa5   :  { %v37_v12 = vadd.f32 %v36_v11, %v35_v10 }
  0xa7   :  { %v38_v13 = vmax.f32 %v37_v12, 0.0 }
  0xa9   :  { %40 = vst.msk [vmem:[%s87_s1] sm:$0xff] %vm39_vm3, %v38_v13 }
  0xaa   :  { %45 = vsyncpa [#allocation3], 1 }

</bundles_post_ra>
